<compile_context>
chip_gen: v5e
topology: v5e:2x2
jax: 0.10.0
libtpu: 0.0.40
codegen_flags: <defaults>
</compile_context>

<pallas_src>
from functools import partial

import numpy as np
import jax
import jax.numpy as jnp
from jax.experimental import pallas as pl
from jax.experimental.pallas import tpu as pltpu

_C = 10                      # conv channels
_H1 = _W1 = 8                # input spatial size implied by the module (flatten = 10*2*2)
_H2 = _W2 = 4                # spatial size after the first 2x2 max-pool
_Hp1, _Wp1 = _H1 + 2, _W1 + 2
_Hp2, _Wp2 = _H2 + 2, _W2 + 2
_LANES = 128                 # lane width of the packed constant slab


# ----------------------------------------------------------------------------
# Constant-slab layout: one (rows, 128) f32 array, every block 8-row aligned.
# ----------------------------------------------------------------------------
def _slab_layout(B, out_actions):
    specs = [
        ("b1", 1, _W1 * _C), ("b2", 1, _W1 * _C),
        ("b3", 1, _W2 * _C), ("b4", 1, _W2 * _C),
        ("bfc", 1, out_actions),
        ("mask1", B * _Hp1, 1), ("mask2", B * _Hp2, 1),
    ]
    for k in range(3):
        specs.append((f"m1_{k}", _W1, _W1 * _C))            # cinp folded in: (8, 80)
    for k in range(3):
        specs.append((f"m2_{k}", _W1 * _C, _W1 * _C))       # pcol1 folded in: (80, 80)
    for k in range(3):
        specs.append((f"m3_{k}", _Wp2 * _C, _W2 * _C))      # (60, 40)
    for k in range(3):
        specs.append((f"m4_{k}", _W2 * _C, _W2 * _C))       # pcol2 folded in: (40, 40)
    for j in range(2):
        specs.append((f"p1r_{j}", B * _Hp2, B * _Hp1))      # pool-1 row pair select
    for j in range(2):
        specs.append((f"p1c_{j}", _W1 * _C, _Wp2 * _C))     # pool-1 col pair select
    for j in range(2):
        specs.append((f"p2r_{j}", 2 * B, B * _Hp2))         # pool-2 row pair select
    for j in range(2):
        specs.append((f"p2c_{j}", _W2 * _C, (_W2 // 2) * _C))
    for h in range(2):
        specs.append((f"tsel_{h}", B, 2 * B))               # FC row gather (h = 0, 1)
    for h in range(2):
        specs.append((f"g_{h}", 2 * _C, out_actions))       # FC weight per h
    off, shapes, cur = {}, {}, 0
    for name, r, c in specs:
        assert c <= _LANES
        off[name], shapes[name] = cur, (r, c)
        cur += -(-r // 8) * 8                                # keep 8-row alignment
    return off, shapes, cur


# ----------------------------------------------------------------------------
# The single fused Pallas kernel
# ----------------------------------------------------------------------------
def _dqn_kernel(x_ref, w_ref, o_ref, y1_ref, xp2_ref, y3_ref, *, off, shapes):
    """Entire DQN forward; every activation stays resident in VMEM / vregs."""

    def blk(name):
        r0, (r, c) = off[name], shapes[name]
        return w_ref[r0:r0 + r, 0:c]                         # static slice of the slab

    def mm(a, b):
        return jnp.dot(a, b, preferred_element_type=jnp.float32)

    def conv3x3_relu(src, wname, bname):
        # src is a halo buffer: rows 1..R hold the activation, rows 0 and R+1
        # are zero.  The three kernel-row taps are overlapping static windows,
        # so no shift matmul is needed; column taps live in the band matrices.
        R = src.shape[0] - 2
        acc = mm(src[0:R, :], blk(wname + "_0"))             # kernel row above
        acc = acc + mm(src[1:R + 1, :], blk(wname + "_1"))   # same row
        acc = acc + mm(src[2:R + 2, :], blk(wname + "_2"))   # row below
        return jnp.maximum(acc + blk(bname), 0.0)            # bias + ReLU

    def store_halo(dst, val, mask_name=None):
        R = val.shape[0]
        if mask_name is not None:
            val = val * blk(mask_name)                       # zero batch-internal pad rows
        dst[0:1, :] = jnp.zeros((1, dst.shape[1]), dst.dtype)
        dst[R + 1:R + 2, :] = jnp.zeros((1, dst.shape[1]), dst.dtype)
        dst[1:R + 1, :] = val

    def maxpool2x2(y, rname, cname):
        # Row-pair max via selection matmuls (reads valid rows only), then
        # column-pair max.
        t = jnp.maximum(mm(blk(rname + "_0"), y), mm(blk(rname + "_1"), y))
        return jnp.maximum(mm(t, blk(cname + "_0")), mm(t, blk(cname + "_1")))

    # ---- conv block 1 -------------------------------------------------------
    y1 = conv3x3_relu(x_ref, "m1", "b1")                     # (B*10, 80)
    store_halo(y1_ref, y1, "mask1")
    y2 = conv3x3_relu(y1_ref, "m2", "b2")                    # (B*10, 80), pad rows unmasked
    xp2 = maxpool2x2(y2, "p1r", "p1c")                       # (B*6, 60), pads are zero
    store_halo(xp2_ref, xp2)

    # ---- conv block 2 -------------------------------------------------------
    y3 = conv3x3_relu(xp2_ref, "m3", "b3")                   # (B*6, 40)
    store_halo(y3_ref, y3, "mask2")
    y4 = conv3x3_relu(y3_ref, "m4", "b4")                    # (B*6, 40), pad rows unmasked
    pooled = maxpool2x2(y4, "p2r", "p2c")                    # (B*2, 20)

    # ---- flatten (PyTorch C,H,W order) + Linear, folded into matmuls --------
    out = mm(mm(blk("tsel_0"), pooled), blk("g_0"))
    out = out + mm(mm(blk("tsel_1"), pooled), blk("g_1"))
    o_ref[...] = out + blk("bfc")


# ----------------------------------------------------------------------------
# One-time construction of the packed constant slab
# ----------------------------------------------------------------------------
def _band_matrices(w_oihw, Wp, W):
    """(Cout,Cin,3,3) OIHW weight -> 3 banded (Wp*Cin, W*Cout) matrices.

    m[kh][wp*Cin + ci, w*Cout + co] = w[co, ci, kh, wp - w] for 0 <= wp-w <= 2.
    """
    w = np.asarray(w_oihw, np.float32)
    cout, cin = w.shape[0], w.shape[1]
    m = np.zeros((3, Wp * cin, W * cout), np.float32)
    for kh in range(3):
        for kw in range(3):
            band = w[:, :, kh, kw].T                         # (cin, cout)
            for wcol in range(W):
                wp = wcol + kw
                m[kh, wp * cin:(wp + 1) * cin, wcol * cout:(wcol + 1) * cout] = band
    return m


def _make_constants(B):
    cinp = np.zeros((_W1, _Wp1), np.float32)                 # Cin = 1 column-pad insert
    for w in range(_W1):
        cinp[w, w + 1] = 1.0

    def col_pad(W, Wp):
        p = np.zeros((W * _C, Wp * _C), np.float32)
        for w in range(W):
            for c in range(_C):
                p[w * _C + c, (w + 1) * _C + c] = 1.0
        return p

    def pool_rows(Hp_in, Hout, Hp_out):
        rows_out = B * (Hp_out if Hp_out else Hout)
        s = np.zeros((2, rows_out, B * Hp_in), np.float32)
        for b in range(B):
            for ho in range(Hout):
                ro = b * Hp_out + 1 + ho if Hp_out else b * Hout + ho
                s[0, ro, b * Hp_in + 1 + 2 * ho] = 1.0
                s[1, ro, b * Hp_in + 2 + 2 * ho] = 1.0
        return s

    def pool_cols(W_in, Wout, Wp_out):
        cols_out = (Wp_out if Wp_out else Wout) * _C
        s = np.zeros((2, W_in * _C, cols_out), np.float32)
        for wo in range(Wout):
            for c in range(_C):
                co = (wo + 1) * _C + c if Wp_out else wo * _C + c
                s[0, 2 * wo * _C + c, co] = 1.0
                s[1, (2 * wo + 1) * _C + c, co] = 1.0
        return s

    def row_mask(Hp, H):
        m = np.zeros((B * Hp, 1), np.float32)
        for b in range(B):
            m[b * Hp + 1:b * Hp + 1 + H, 0] = 1.0
        return m

    tsel = np.zeros((2, B, 2 * B), np.float32)
    for h in range(2):
        for b in range(B):
            tsel[h, b, 2 * b + h] = 1.0

    return dict(
        cinp=cinp, pcol1=col_pad(_W1, _Wp1), pcol2=col_pad(_W2, _Wp2),
        p1r=pool_rows(_Hp1, _H1 // 2, _Hp2), p1c=pool_cols(_W1, _W1 // 2, _Wp2),
        p2r=pool_rows(_Hp2, _H2 // 2, None), p2c=pool_cols(_W2, _W2 // 2, None),
        mask1=row_mask(_Hp1, _H1), mask2=row_mask(_Hp2, _H2), tsel=tsel)


def prepare_params(params, batch_size):
    """One-time packing of PyTorch-style params into a single constant slab."""
    B = batch_size
    out_actions = int(np.asarray(params["fc_w"]).shape[0])
    off, shapes, nrows = _slab_layout(B, out_actions)
    slab = np.zeros((nrows, _LANES), np.float32)

    def put(name, mat):
        mat = np.asarray(mat, np.float32)
        r, c = shapes[name]
        assert mat.shape == (r, c), (name, mat.shape, (r, c))
        slab[off[name]:off[name] + r, :c] = mat

    cst = _make_constants(B)
    m1 = _band_matrices(params["c1_w"], _Wp1, _W1)
    m2 = _band_matrices(params["c2_w"], _Wp1, _W1)
    m3 = _band_matrices(params["c3_w"], _Wp2, _W2)
    m4 = _band_matrices(params["c4_w"], _Wp2, _W2)
    for k in range(3):
        put(f"m1_{k}", cst["cinp"] @ m1[k])                  # fold input column pad
        put(f"m2_{k}", cst["pcol1"] @ m2[k])                 # fold block-1 column pad
        put(f"m3_{k}", m3[k])
        put(f"m4_{k}", cst["pcol2"] @ m4[k])                 # fold block-2 column pad
    put("b1", np.tile(np.asarray(params["c1_b"], np.float32), _W1)[None, :])
    put("b2", np.tile(np.asarray(params["c2_b"], np.float32), _W1)[None, :])
    put("b3", np.tile(np.asarray(params["c3_b"], np.float32), _W2)[None, :])
    put("b4", np.tile(np.asarray(params["c4_b"], np.float32), _W2)[None, :])
    for j in range(2):
        put(f"p1r_{j}", cst["p1r"][j])
        put(f"p1c_{j}", cst["p1c"][j])
        put(f"p2r_{j}", cst["p2r"][j])
        put(f"p2c_{j}", cst["p2c"][j])
    put("mask1", cst["mask1"])
    put("mask2", cst["mask2"])
    for h in range(2):
        put(f"tsel_{h}", cst["tsel"][h])
    fw = np.asarray(params["fc_w"], np.float32).reshape(out_actions, _C, 2, 2)
    g = np.transpose(fw, (2, 3, 1, 0)).reshape(2, 2 * _C, out_actions)
    for h in range(2):
        put(f"g_{h}", g[h])
    put("bfc", np.asarray(params["fc_b"], np.float32)[None, :])
    return {"slab": jnp.asarray(slab), "out_actions": out_actions}


# ----------------------------------------------------------------------------
# Forward pass: one pallas_call, 2 inputs, full-array VMEM blocks, no grid.
# ----------------------------------------------------------------------------
@partial(jax.jit, static_argnames=("out_actions",))
def _dqn_forward_impl(slab, x_nchw, *, out_actions):
    B = x_nchw.shape[0]
    # Zero rows above/below every image (conv padding) plus one extra zero
    # halo row at the very top and bottom for the in-kernel row-tap windows.
    xin = jnp.pad(x_nchw.astype(jnp.float32).reshape(B, _H1, _W1),
                  ((0, 0), (1, 1), (0, 0))).reshape(B * _Hp1, _W1)
    xin = jnp.pad(xin, ((1, 1), (0, 0)))                     # (B*10 + 2, 8)
    off, shapes, _ = _slab_layout(B, out_actions)
    kernel = partial(_dqn_kernel, off=off, shapes=shapes)

    def full_spec(shape):
        return pl.BlockSpec(shape, lambda *_a, _n=len(shape): (0,) * _n)

    return pl.pallas_call(
        kernel,
        out_shape=jax.ShapeDtypeStruct((B, out_actions), jnp.float32),
        in_specs=[full_spec(xin.shape), full_spec(slab.shape)],
        out_specs=full_spec((B, out_actions)),
        scratch_shapes=[
            pltpu.VMEM((B * _Hp1 + 2, _W1 * _C), jnp.float32),   # y1 halo buffer
            pltpu.VMEM((B * _Hp2 + 2, _Wp2 * _C), jnp.float32),  # pooled/xpad2 halo buffer
            pltpu.VMEM((B * _Hp2 + 2, _W2 * _C), jnp.float32),   # y3 halo buffer
        ],
    )(xin, slab)


def dqn_forward(prep, x_nchw):
    return _dqn_forward_impl(prep["slab"], x_nchw, out_actions=prep["out_actions"])


# ----------------------------------------------------------------------------
# Parameter init (deterministic, PyTorch-like uniform(-1/sqrt(fan_in), +))
# ----------------------------------------------------------------------------
def _uniform(key, shape, bound):
    return jax.random.uniform(key, shape, jnp.float32, -bound, bound)


def init_params(key, out_actions):
    ks = jax.random.split(key, 10)
    params = {}

    def conv_init(kw, kb, cin, cout):
        bound = 1.0 / float(np.sqrt(cin * 9.0))
        return _uniform(kw, (cout, cin, 3, 3), bound), _uniform(kb, (cout,), bound)

    params["c1_w"], params["c1_b"] = conv_init(ks[0], ks[1], 1, _C)
    params["c2_w"], params["c2_b"] = conv_init(ks[2], ks[3], _C, _C)
    params["c3_w"], params["c3_b"] = conv_init(ks[4], ks[5], _C, _C)
    params["c4_w"], params["c4_b"] = conv_init(ks[6], ks[7], _C, _C)
    bound = 1.0 / float(np.sqrt(40.0))
    params["fc_w"] = _uniform(ks[8], (out_actions, 40), bound)    # PyTorch (out, in)
    params["fc_b"] = _uniform(ks[9], (out_actions,), bound)
    return params


# ----------------------------------------------------------------------------
# Pure-JAX reference (matches PyTorch DQN.forward semantics)
# ----------------------------------------------------------------------------
def _reference_forward(params, x_nchw):
    def conv(x, w, b):
        y = jax.lax.conv_general_dilated(
            x, w, window_strides=(1, 1), padding=((1, 1), (1, 1)),
            dimension_numbers=("NCHW", "OIHW", "NCHW"))
        return jax.nn.relu(y + b.reshape(1, -1, 1, 1))

    def pool(x):
        return jax.lax.reduce_window(
            x, -jnp.inf, jax.lax.max, (1, 1, 2, 2), (1, 1, 2, 2), "VALID")

    x = x_nchw.astype(jnp.float32)
    x = conv(x, params["c1_w"], params["c1_b"])
    x = conv(x, params["c2_w"], params["c2_b"])
    x = pool(x)
    x = conv(x, params["c3_w"], params["c3_b"])
    x = conv(x, params["c4_w"], params["c4_b"])
    x = pool(x)
    x = x.reshape(x.shape[0], -1)                            # (B, C*H*W) = (B, 40)
    return x @ params["fc_w"].T + params["fc_b"]


if __name__ == "__main__":
    out_actions = 4
    key = jax.random.PRNGKey(0)
    k_x, k_p = jax.random.split(key)
    # Input shape implied by the module: 1 channel, 8x8 spatial
    # (two 2x2 max-pools -> 2x2, flatten -> 10*2*2 = 40 features).
    x = jax.random.normal(k_x, (2, 1, 8, 8), dtype=jnp.float32)
    params = init_params(k_p, out_actions)
    prep = prepare_params(params, batch_size=x.shape[0])

    y = dqn_forward(prep, x)
    jax.block_until_ready(y)
    assert y.shape == (2, out_actions), y.shape

    y_ref = _reference_forward(params, x)
    err = float(jnp.max(jnp.abs(y - y_ref)))
    assert err < 1e-4, f"kernel/reference mismatch: max |err| = {err}"
    print("KERNEL_OK")
</pallas_src>

<mosaic_0001>
module attributes {stable_mosaic.version = 11 : i64} {
  func.func @_dqn_kernel(%arg0: memref<22x8xf32, #tpu.memory_space<vmem>>, %arg1: memref<1008x128xf32, #tpu.memory_space<vmem>>, %arg2: memref<2x4xf32, #tpu.memory_space<vmem>>, %arg3: memref<22x80xf32, #tpu.memory_space<vmem>>, %arg4: memref<14x60xf32, #tpu.memory_space<vmem>>, %arg5: memref<14x40xf32, #tpu.memory_space<vmem>>) attributes {dimension_semantics = [], scalar_prefetch = 0 : i64, scratch_operands = 3 : i64, tpu.core_type = #tpu.core_type<tc>} {
    %c0 = arith.constant 0 : index
    %c0_0 = arith.constant 0 : index
    %0 = vector.load %arg0[%c0, %c0_0] : memref<22x8xf32, #tpu.memory_space<vmem>>, vector<20x8xf32>
    %c80 = arith.constant 80 : index
    %c0_1 = arith.constant 0 : index
    %1 = vector.load %arg1[%c80, %c0_1] : memref<1008x128xf32, #tpu.memory_space<vmem>>, vector<8x80xf32>
    %cst = arith.constant dense<0.000000e+00> : vector<20x80xf32>
    %2 = tpu.matmul %0, %1, %cst {dimension_numbers = #tpu.dot_dimension_numbers<[1], [0], [0], [1], [0, 0, 1, 1], [], []>} : vector<20x8xf32>, vector<8x80xf32>, vector<20x80xf32> -> vector<20x80xf32>
    %c1 = arith.constant 1 : index
    %c0_2 = arith.constant 0 : index
    %3 = vector.load %arg0[%c1, %c0_2] : memref<22x8xf32, #tpu.memory_space<vmem>>, vector<20x8xf32>
    %c88 = arith.constant 88 : index
    %c0_3 = arith.constant 0 : index
    %4 = vector.load %arg1[%c88, %c0_3] : memref<1008x128xf32, #tpu.memory_space<vmem>>, vector<8x80xf32>
    %cst_4 = arith.constant dense<0.000000e+00> : vector<20x80xf32>
    %5 = tpu.matmul %3, %4, %cst_4 {dimension_numbers = #tpu.dot_dimension_numbers<[1], [0], [0], [1], [0, 0, 1, 1], [], []>} : vector<20x8xf32>, vector<8x80xf32>, vector<20x80xf32> -> vector<20x80xf32>
    %6 = arith.addf %2, %5 : vector<20x80xf32>
    %c2 = arith.constant 2 : index
    %c0_5 = arith.constant 0 : index
    %7 = vector.load %arg0[%c2, %c0_5] : memref<22x8xf32, #tpu.memory_space<vmem>>, vector<20x8xf32>
    %c96 = arith.constant 96 : index
    %c0_6 = arith.constant 0 : index
    %8 = vector.load %arg1[%c96, %c0_6] : memref<1008x128xf32, #tpu.memory_space<vmem>>, vector<8x80xf32>
    %cst_7 = arith.constant dense<0.000000e+00> : vector<20x80xf32>
    %9 = tpu.matmul %7, %8, %cst_7 {dimension_numbers = #tpu.dot_dimension_numbers<[1], [0], [0], [1], [0, 0, 1, 1], [], []>} : vector<20x8xf32>, vector<8x80xf32>, vector<20x80xf32> -> vector<20x80xf32>
    %10 = arith.addf %6, %9 : vector<20x80xf32>
    %c0_8 = arith.constant 0 : index
    %c0_9 = arith.constant 0 : index
    %11 = vector.load %arg1[%c0_8, %c0_9] : memref<1008x128xf32, #tpu.memory_space<vmem>>, vector<1x80xf32>
    %12 = vector.broadcast %11 : vector<1x80xf32> to vector<20x80xf32>
    %13 = arith.addf %10, %12 : vector<20x80xf32>
    %cst_10 = arith.constant 0.000000e+00 : f32
    %14 = vector.broadcast %cst_10 : f32 to vector<20x80xf32>
    %15 = arith.maximumf %13, %14 : vector<20x80xf32>
    %c40 = arith.constant 40 : index
    %c0_11 = arith.constant 0 : index
    %16 = vector.load %arg1[%c40, %c0_11] : memref<1008x128xf32, #tpu.memory_space<vmem>>, vector<20x1xf32>
    %17 = vector.broadcast %16 : vector<20x1xf32> to vector<20x80xf32>
    %18 = arith.mulf %15, %17 : vector<20x80xf32>
    %cst_12 = arith.constant 0.000000e+00 : f32
    %19 = vector.broadcast %cst_12 : f32 to vector<1x80xf32>
    %c0_13 = arith.constant 0 : index
    %c0_14 = arith.constant 0 : index
    %20 = vector.load %arg3[%c0_13, %c0_14] : memref<22x80xf32, #tpu.memory_space<vmem>>, vector<1x80xf32>
    tpu.vector_store %arg3[%c0_13, %c0_14], %19 {strides = array<i32>} : memref<22x80xf32, #tpu.memory_space<vmem>>, vector<1x80xf32>,
    %cst_15 = arith.constant 0.000000e+00 : f32
    %21 = vector.broadcast %cst_15 : f32 to vector<1x80xf32>
    %c21 = arith.constant 21 : index
    %c0_16 = arith.constant 0 : index
    %22 = vector.load %arg3[%c21, %c0_16] : memref<22x80xf32, #tpu.memory_space<vmem>>, vector<1x80xf32>
    tpu.vector_store %arg3[%c21, %c0_16], %21 {strides = array<i32>} : memref<22x80xf32, #tpu.memory_space<vmem>>, vector<1x80xf32>,
    %c1_17 = arith.constant 1 : index
    %c0_18 = arith.constant 0 : index
    %23 = vector.load %arg3[%c1_17, %c0_18] : memref<22x80xf32, #tpu.memory_space<vmem>>, vector<20x80xf32>
    tpu.vector_store %arg3[%c1_17, %c0_18], %18 {strides = array<i32>} : memref<22x80xf32, #tpu.memory_space<vmem>>, vector<20x80xf32>,
    %c0_19 = arith.constant 0 : index
    %c0_20 = arith.constant 0 : index
    %24 = vector.load %arg3[%c0_19, %c0_20] : memref<22x80xf32, #tpu.memory_space<vmem>>, vector<20x80xf32>
    %c104 = arith.constant 104 : index
    %c0_21 = arith.constant 0 : index
    %25 = vector.load %arg1[%c104, %c0_21] : memref<1008x128xf32, #tpu.memory_space<vmem>>, vector<80x80xf32>
    %cst_22 = arith.constant dense<0.000000e+00> : vector<20x80xf32>
    %26 = tpu.matmul %24, %25, %cst_22 {dimension_numbers = #tpu.dot_dimension_numbers<[1], [0], [0], [1], [0, 0, 1, 1], [], []>} : vector<20x80xf32>, vector<80x80xf32>, vector<20x80xf32> -> vector<20x80xf32>
    %c1_23 = arith.constant 1 : index
    %c0_24 = arith.constant 0 : index
    %27 = vector.load %arg3[%c1_23, %c0_24] : memref<22x80xf32, #tpu.memory_space<vmem>>, vector<20x80xf32>
    %c184 = arith.constant 184 : index
    %c0_25 = arith.constant 0 : index
    %28 = vector.load %arg1[%c184, %c0_25] : memref<1008x128xf32, #tpu.memory_space<vmem>>, vector<80x80xf32>
    %cst_26 = arith.constant dense<0.000000e+00> : vector<20x80xf32>
    %29 = tpu.matmul %27, %28, %cst_26 {dimension_numbers = #tpu.dot_dimension_numbers<[1], [0], [0], [1], [0, 0, 1, 1], [], []>} : vector<20x80xf32>, vector<80x80xf32>, vector<20x80xf32> -> vector<20x80xf32>
    %30 = arith.addf %26, %29 : vector<20x80xf32>
    %c2_27 = arith.constant 2 : index
    %c0_28 = arith.constant 0 : index
    %31 = vector.load %arg3[%c2_27, %c0_28] : memref<22x80xf32, #tpu.memory_space<vmem>>, vector<20x80xf32>
    %c264 = arith.constant 264 : index
    %c0_29 = arith.constant 0 : index
    %32 = vector.load %arg1[%c264, %c0_29] : memref<1008x128xf32, #tpu.memory_space<vmem>>, vector<80x80xf32>
    %cst_30 = arith.constant dense<0.000000e+00> : vector<20x80xf32>
    %33 = tpu.matmul %31, %32, %cst_30 {dimension_numbers = #tpu.dot_dimension_numbers<[1], [0], [0], [1], [0, 0, 1, 1], [], []>} : vector<20x80xf32>, vector<80x80xf32>, vector<20x80xf32> -> vector<20x80xf32>
    %34 = arith.addf %30, %33 : vector<20x80xf32>
    %c8 = arith.constant 8 : index
    %c0_31 = arith.constant 0 : index
    %35 = vector.load %arg1[%c8, %c0_31] : memref<1008x128xf32, #tpu.memory_space<vmem>>, vector<1x80xf32>
    %36 = vector.broadcast %35 : vector<1x80xf32> to vector<20x80xf32>
    %37 = arith.addf %34, %36 : vector<20x80xf32>
    %cst_32 = arith.constant 0.000000e+00 : f32
    %38 = vector.broadcast %cst_32 : f32 to vector<20x80xf32>
    %39 = arith.maximumf %37, %38 : vector<20x80xf32>
    %c656 = arith.constant 656 : index
    %c0_33 = arith.constant 0 : index
    %40 = vector.load %arg1[%c656, %c0_33] : memref<1008x128xf32, #tpu.memory_space<vmem>>, vector<12x20xf32>
    %cst_34 = arith.constant dense<0.000000e+00> : vector<12x80xf32>
    %41 = tpu.matmul %40, %39, %cst_34 {dimension_numbers = #tpu.dot_dimension_numbers<[1], [0], [0], [1], [0, 0, 1, 1], [], []>} : vector<12x20xf32>, vector<20x80xf32>, vector<12x80xf32> -> vector<12x80xf32>
    %c672 = arith.constant 672 : index
    %c0_35 = arith.constant 0 : index
    %42 = vector.load %arg1[%c672, %c0_35] : memref<1008x128xf32, #tpu.memory_space<vmem>>, vector<12x20xf32>
    %cst_36 = arith.constant dense<0.000000e+00> : vector<12x80xf32>
    %43 = tpu.matmul %42, %39, %cst_36 {dimension_numbers = #tpu.dot_dimension_numbers<[1], [0], [0], [1], [0, 0, 1, 1], [], []>} : vector<12x20xf32>, vector<20x80xf32>, vector<12x80xf32> -> vector<12x80xf32>
    %44 = arith.maximumf %41, %43 : vector<12x80xf32>
    %c688 = arith.constant 688 : index
    %c0_37 = arith.constant 0 : index
    %45 = vector.load %arg1[%c688, %c0_37] : memref<1008x128xf32, #tpu.memory_space<vmem>>, vector<80x60xf32>
    %cst_38 = arith.constant dense<0.000000e+00> : vector<12x60xf32>
    %46 = tpu.matmul %44, %45, %cst_38 {dimension_numbers = #tpu.dot_dimension_numbers<[1], [0], [0], [1], [0, 0, 1, 1], [], []>} : vector<12x80xf32>, vector<80x60xf32>, vector<12x60xf32> -> vector<12x60xf32>
    %c768 = arith.constant 768 : index
    %c0_39 = arith.constant 0 : index
    %47 = vector.load %arg1[%c768, %c0_39] : memref<1008x128xf32, #tpu.memory_space<vmem>>, vector<80x60xf32>
    %cst_40 = arith.constant dense<0.000000e+00> : vector<12x60xf32>
    %48 = tpu.matmul %44, %47, %cst_40 {dimension_numbers = #tpu.dot_dimension_numbers<[1], [0], [0], [1], [0, 0, 1, 1], [], []>} : vector<12x80xf32>, vector<80x60xf32>, vector<12x60xf32> -> vector<12x60xf32>
    %49 = arith.maximumf %46, %48 : vector<12x60xf32>
    %cst_41 = arith.constant 0.000000e+00 : f32
    %50 = vector.broadcast %cst_41 : f32 to vector<1x60xf32>
    %c0_42 = arith.constant 0 : index
    %c0_43 = arith.constant 0 : index
    %51 = vector.load %arg4[%c0_42, %c0_43] : memref<14x60xf32, #tpu.memory_space<vmem>>, vector<1x60xf32>
    tpu.vector_store %arg4[%c0_42, %c0_43], %50 {strides = array<i32>} : memref<14x60xf32, #tpu.memory_space<vmem>>, vector<1x60xf32>,
    %cst_44 = arith.constant 0.000000e+00 : f32
    %52 = vector.broadcast %cst_44 : f32 to vector<1x60xf32>
    %c13 = arith.constant 13 : index
    %c0_45 = arith.constant 0 : index
    %53 = vector.load %arg4[%c13, %c0_45] : memref<14x60xf32, #tpu.memory_space<vmem>>, vector<1x60xf32>
    tpu.vector_store %arg4[%c13, %c0_45], %52 {strides = array<i32>} : memref<14x60xf32, #tpu.memory_space<vmem>>, vector<1x60xf32>,
    %c1_46 = arith.constant 1 : index
    %c0_47 = arith.constant 0 : index
    %54 = vector.load %arg4[%c1_46, %c0_47] : memref<14x60xf32, #tpu.memory_space<vmem>>, vector<12x60xf32>
    tpu.vector_store %arg4[%c1_46, %c0_47], %49 {strides = array<i32>} : memref<14x60xf32, #tpu.memory_space<vmem>>, vector<12x60xf32>,
    %c0_48 = arith.constant 0 : index
    %c0_49 = arith.constant 0 : index
    %55 = vector.load %arg4[%c0_48, %c0_49] : memref<14x60xf32, #tpu.memory_space<vmem>>, vector<12x60xf32>
    %c344 = arith.constant 344 : index
    %c0_50 = arith.constant 0 : index
    %56 = vector.load %arg1[%c344, %c0_50] : memref<1008x128xf32, #tpu.memory_space<vmem>>, vector<60x40xf32>
    %cst_51 = arith.constant dense<0.000000e+00> : vector<12x40xf32>
    %57 = tpu.matmul %55, %56, %cst_51 {dimension_numbers = #tpu.dot_dimension_numbers<[1], [0], [0], [1], [0, 0, 1, 1], [], []>} : vector<12x60xf32>, vector<60x40xf32>, vector<12x40xf32> -> vector<12x40xf32>
    %c1_52 = arith.constant 1 : index
    %c0_53 = arith.constant 0 : index
    %58 = vector.load %arg4[%c1_52, %c0_53] : memref<14x60xf32, #tpu.memory_space<vmem>>, vector<12x60xf32>
    %c408 = arith.constant 408 : index
    %c0_54 = arith.constant 0 : index
    %59 = vector.load %arg1[%c408, %c0_54] : memref<1008x128xf32, #tpu.memory_space<vmem>>, vector<60x40xf32>
    %cst_55 = arith.constant dense<0.000000e+00> : vector<12x40xf32>
    %60 = tpu.matmul %58, %59, %cst_55 {dimension_numbers = #tpu.dot_dimension_numbers<[1], [0], [0], [1], [0, 0, 1, 1], [], []>} : vector<12x60xf32>, vector<60x40xf32>, vector<12x40xf32> -> vector<12x40xf32>
    %61 = arith.addf %57, %60 : vector<12x40xf32>
    %c2_56 = arith.constant 2 : index
    %c0_57 = arith.constant 0 : index
    %62 = vector.load %arg4[%c2_56, %c0_57] : memref<14x60xf32, #tpu.memory_space<vmem>>, vector<12x60xf32>
    %c472 = arith.constant 472 : index
    %c0_58 = arith.constant 0 : index
    %63 = vector.load %arg1[%c472, %c0_58] : memref<1008x128xf32, #tpu.memory_space<vmem>>, vector<60x40xf32>
    %cst_59 = arith.constant dense<0.000000e+00> : vector<12x40xf32>
    %64 = tpu.matmul %62, %63, %cst_59 {dimension_numbers = #tpu.dot_dimension_numbers<[1], [0], [0], [1], [0, 0, 1, 1], [], []>} : vector<12x60xf32>, vector<60x40xf32>, vector<12x40xf32> -> vector<12x40xf32>
    %65 = arith.addf %61, %64 : vector<12x40xf32>
    %c16 = arith.constant 16 : index
    %c0_60 = arith.constant 0 : index
    %66 = vector.load %arg1[%c16, %c0_60] : memref<1008x128xf32, #tpu.memory_space<vmem>>, vector<1x40xf32>
    %67 = vector.broadcast %66 : vector<1x40xf32> to vector<12x40xf32>
    %68 = arith.addf %65, %67 : vector<12x40xf32>
    %cst_61 = arith.constant 0.000000e+00 : f32
    %69 = vector.broadcast %cst_61 : f32 to vector<12x40xf32>
    %70 = arith.maximumf %68, %69 : vector<12x40xf32>
    %c64 = arith.constant 64 : index
    %c0_62 = arith.constant 0 : index
    %71 = vector.load %arg1[%c64, %c0_62] : memref<1008x128xf32, #tpu.memory_space<vmem>>, vector<12x1xf32>
    %72 = vector.broadcast %71 : vector<12x1xf32> to vector<12x40xf32>
    %73 = arith.mulf %70, %72 : vector<12x40xf32>
    %cst_63 = arith.constant 0.000000e+00 : f32
    %74 = vector.broadcast %cst_63 : f32 to vector<1x40xf32>
    %c0_64 = arith.constant 0 : index
    %c0_65 = arith.constant 0 : index
    %75 = vector.load %arg5[%c0_64, %c0_65] : memref<14x40xf32, #tpu.memory_space<vmem>>, vector<1x40xf32>
    tpu.vector_store %arg5[%c0_64, %c0_65], %74 {strides = array<i32>} : memref<14x40xf32, #tpu.memory_space<vmem>>, vector<1x40xf32>,
    %cst_66 = arith.constant 0.000000e+00 : f32
    %76 = vector.broadcast %cst_66 : f32 to vector<1x40xf32>
    %c13_67 = arith.constant 13 : index
    %c0_68 = arith.constant 0 : index
    %77 = vector.load %arg5[%c13_67, %c0_68] : memref<14x40xf32, #tpu.memory_space<vmem>>, vector<1x40xf32>
    tpu.vector_store %arg5[%c13_67, %c0_68], %76 {strides = array<i32>} : memref<14x40xf32, #tpu.memory_space<vmem>>, vector<1x40xf32>,
    %c1_69 = arith.constant 1 : index
    %c0_70 = arith.constant 0 : index
    %78 = vector.load %arg5[%c1_69, %c0_70] : memref<14x40xf32, #tpu.memory_space<vmem>>, vector<12x40xf32>
    tpu.vector_store %arg5[%c1_69, %c0_70], %73 {strides = array<i32>} : memref<14x40xf32, #tpu.memory_space<vmem>>, vector<12x40xf32>,
    %c0_71 = arith.constant 0 : index
    %c0_72 = arith.constant 0 : index
    %79 = vector.load %arg5[%c0_71, %c0_72] : memref<14x40xf32, #tpu.memory_space<vmem>>, vector<12x40xf32>
    %c536 = arith.constant 536 : index
    %c0_73 = arith.constant 0 : index
    %80 = vector.load %arg1[%c536, %c0_73] : memref<1008x128xf32, #tpu.memory_space<vmem>>, vector<40x40xf32>
    %cst_74 = arith.constant dense<0.000000e+00> : vector<12x40xf32>
    %81 = tpu.matmul %79, %80, %cst_74 {dimension_numbers = #tpu.dot_dimension_numbers<[1], [0], [0], [1], [0, 0, 1, 1], [], []>} : vector<12x40xf32>, vector<40x40xf32>, vector<12x40xf32> -> vector<12x40xf32>
    %c1_75 = arith.constant 1 : index
    %c0_76 = arith.constant 0 : index
    %82 = vector.load %arg5[%c1_75, %c0_76] : memref<14x40xf32, #tpu.memory_space<vmem>>, vector<12x40xf32>
    %c576 = arith.constant 576 : index
    %c0_77 = arith.constant 0 : index
    %83 = vector.load %arg1[%c576, %c0_77] : memref<1008x128xf32, #tpu.memory_space<vmem>>, vector<40x40xf32>
    %cst_78 = arith.constant dense<0.000000e+00> : vector<12x40xf32>
    %84 = tpu.matmul %82, %83, %cst_78 {dimension_numbers = #tpu.dot_dimension_numbers<[1], [0], [0], [1], [0, 0, 1, 1], [], []>} : vector<12x40xf32>, vector<40x40xf32>, vector<12x40xf32> -> vector<12x40xf32>
    %85 = arith.addf %81, %84 : vector<12x40xf32>
    %c2_79 = arith.constant 2 : index
    %c0_80 = arith.constant 0 : index
    %86 = vector.load %arg5[%c2_79, %c0_80] : memref<14x40xf32, #tpu.memory_space<vmem>>, vector<12x40xf32>
    %c616 = arith.constant 616 : index
    %c0_81 = arith.constant 0 : index
    %87 = vector.load %arg1[%c616, %c0_81] : memref<1008x128xf32, #tpu.memory_space<vmem>>, vector<40x40xf32>
    %cst_82 = arith.constant dense<0.000000e+00> : vector<12x40xf32>
    %88 = tpu.matmul %86, %87, %cst_82 {dimension_numbers = #tpu.dot_dimension_numbers<[1], [0], [0], [1], [0, 0, 1, 1], [], []>} : vector<12x40xf32>, vector<40x40xf32>, vector<12x40xf32> -> vector<12x40xf32>
    %89 = arith.addf %85, %88 : vector<12x40xf32>
    %c24 = arith.constant 24 : index
    %c0_83 = arith.constant 0 : index
    %90 = vector.load %arg1[%c24, %c0_83] : memref<1008x128xf32, #tpu.memory_space<vmem>>, vector<1x40xf32>
    %91 = vector.broadcast %90 : vector<1x40xf32> to vector<12x40xf32>
    %92 = arith.addf %89, %91 : vector<12x40xf32>
    %cst_84 = arith.constant 0.000000e+00 : f32
    %93 = vector.broadcast %cst_84 : f32 to vector<12x40xf32>
    %94 = arith.maximumf %92, %93 : vector<12x40xf32>
    %c848 = arith.constant 848 : index
    %c0_85 = arith.constant 0 : index
    %95 = vector.load %arg1[%c848, %c0_85] : memref<1008x128xf32, #tpu.memory_space<vmem>>, vector<4x12xf32>
    %cst_86 = arith.constant dense<0.000000e+00> : vector<4x40xf32>
    %96 = tpu.matmul %95, %94, %cst_86 {dimension_numbers = #tpu.dot_dimension_numbers<[1], [0], [0], [1], [0, 0, 1, 1], [], []>} : vector<4x12xf32>, vector<12x40xf32>, vector<4x40xf32> -> vector<4x40xf32>
    %c856 = arith.constant 856 : index
    %c0_87 = arith.constant 0 : index
    %97 = vector.load %arg1[%c856, %c0_87] : memref<1008x128xf32, #tpu.memory_space<vmem>>, vector<4x12xf32>
    %cst_88 = arith.constant dense<0.000000e+00> : vector<4x40xf32>
    %98 = tpu.matmul %97, %94, %cst_88 {dimension_numbers = #tpu.dot_dimension_numbers<[1], [0], [0], [1], [0, 0, 1, 1], [], []>} : vector<4x12xf32>, vector<12x40xf32>, vector<4x40xf32> -> vector<4x40xf32>
    %99 = arith.maximumf %96, %98 : vector<4x40xf32>
    %c864 = arith.constant 864 : index
    %c0_89 = arith.constant 0 : index
    %100 = vector.load %arg1[%c864, %c0_89] : memref<1008x128xf32, #tpu.memory_space<vmem>>, vector<40x20xf32>
    %cst_90 = arith.constant dense<0.000000e+00> : vector<4x20xf32>
    %101 = tpu.matmul %99, %100, %cst_90 {dimension_numbers = #tpu.dot_dimension_numbers<[1], [0], [0], [1], [0, 0, 1, 1], [], []>} : vector<4x40xf32>, vector<40x20xf32>, vector<4x20xf32> -> vector<4x20xf32>
    %c904 = arith.constant 904 : index
    %c0_91 = arith.constant 0 : index
    %102 = vector.load %arg1[%c904, %c0_91] : memref<1008x128xf32, #tpu.memory_space<vmem>>, vector<40x20xf32>
    %cst_92 = arith.constant dense<0.000000e+00> : vector<4x20xf32>
    %103 = tpu.matmul %99, %102, %cst_92 {dimension_numbers = #tpu.dot_dimension_numbers<[1], [0], [0], [1], [0, 0, 1, 1], [], []>} : vector<4x40xf32>, vector<40x20xf32>, vector<4x20xf32> -> vector<4x20xf32>
    %104 = arith.maximumf %101, %103 : vector<4x20xf32>
    %c944 = arith.constant 944 : index
    %c0_93 = arith.constant 0 : index
    %105 = vector.load %arg1[%c944, %c0_93] : memref<1008x128xf32, #tpu.memory_space<vmem>>, vector<2x4xf32>
    %cst_94 = arith.constant dense<0.000000e+00> : vector<2x20xf32>
    %106 = tpu.matmul %105, %104, %cst_94 {dimension_numbers = #tpu.dot_dimension_numbers<[1], [0], [0], [1], [0, 0, 1, 1], [], []>} : vector<2x4xf32>, vector<4x20xf32>, vector<2x20xf32> -> vector<2x20xf32>
    %c960 = arith.constant 960 : index
    %c0_95 = arith.constant 0 : index
    %107 = vector.load %arg1[%c960, %c0_95] : memref<1008x128xf32, #tpu.memory_space<vmem>>, vector<20x4xf32>
    %cst_96 = arith.constant dense<0.000000e+00> : vector<2x4xf32>
    %108 = tpu.matmul %106, %107, %cst_96 {dimension_numbers = #tpu.dot_dimension_numbers<[1], [0], [0], [1], [0, 0, 1, 1], [], []>} : vector<2x20xf32>, vector<20x4xf32>, vector<2x4xf32> -> vector<2x4xf32>
    %c952 = arith.constant 952 : index
    %c0_97 = arith.constant 0 : index
    %109 = vector.load %arg1[%c952, %c0_97] : memref<1008x128xf32, #tpu.memory_space<vmem>>, vector<2x4xf32>
    %cst_98 = arith.constant dense<0.000000e+00> : vector<2x20xf32>
    %110 = tpu.matmul %109, %104, %cst_98 {dimension_numbers = #tpu.dot_dimension_numbers<[1], [0], [0], [1], [0, 0, 1, 1], [], []>} : vector<2x4xf32>, vector<4x20xf32>, vector<2x20xf32> -> vector<2x20xf32>
    %c984 = arith.constant 984 : index
    %c0_99 = arith.constant 0 : index
    %111 = vector.load %arg1[%c984, %c0_99] : memref<1008x128xf32, #tpu.memory_space<vmem>>, vector<20x4xf32>
    %cst_100 = arith.constant dense<0.000000e+00> : vector<2x4xf32>
    %112 = tpu.matmul %110, %111, %cst_100 {dimension_numbers = #tpu.dot_dimension_numbers<[1], [0], [0], [1], [0, 0, 1, 1], [], []>} : vector<2x20xf32>, vector<20x4xf32>, vector<2x4xf32> -> vector<2x4xf32>
    %113 = arith.addf %108, %112 : vector<2x4xf32>
    %c32 = arith.constant 32 : index
    %c0_101 = arith.constant 0 : index
    %114 = vector.load %arg1[%c32, %c0_101] : memref<1008x128xf32, #tpu.memory_space<vmem>>, vector<1x4xf32>
    %115 = vector.broadcast %114 : vector<1x4xf32> to vector<2x4xf32>
    %116 = arith.addf %113, %115 : vector<2x4xf32>
    %c0_102 = arith.constant 0 : index
    %c0_103 = arith.constant 0 : index
    %117 = vector.load %arg2[%c0_102, %c0_103] : memref<2x4xf32, #tpu.memory_space<vmem>>, vector<2x4xf32>
    tpu.vector_store %arg2[%c0_102, %c0_103], %116 {strides = array<i32>} : memref<2x4xf32, #tpu.memory_space<vmem>>, vector<2x4xf32>,
    return
  }
}

</mosaic_0001>

<bundles_post_ra>
// kernel: _dqn_forward_impl.1
= control target key start
LH: loop header
LB: loop body
LE: loop exit
PB: predicated region body
PF: predicated region fallthrough
CT: control target
= control target key end

     0   :  { %7 = vsyncpa [#allocation6], 0  ;;  %s1241_s0 = inlined_call_operand.vmem [shape: f32[22,8], index: 0, kind: input, shape index: {}]   ;;  %s1242_s1 = inlined_call_operand.hbm [shape: f32[1008,128], index: 1, kind: input, shape index: {}]   ;;  %s1243_s2 = inlined_call_operand.hbm [shape: f32[2,4], index: 2, kind: output, shape index: {}]  }
   0x1   :  { %8 = vsyncpa [#allocation7], 0  ;;  %s15_s11 = sshll.u32 %s1242_s1, 4  ;;  %s1124_s12 = smov [#allocation5]   ;;  %s16_s11 = int_to_ptr.hbm [resolvable:$true] %s15_s11 }
   0x2   :  { %s17_s13 = sshll.u32 %s1124_s12, 4  ;;  %s1125_s14 = smov 128   ;;  %s18_s13 = int_to_ptr.vmem [resolvable:$true] %s17_s13 }
   0x3   :  { %s1126_s15 = smov 8  }
   0x4   :  { %23 = dma.hbm_to_vmem [thread:$0]  %s16_s11, 16128, %s18_s13, [#allocation6], %s1125_s14, %s1125_s14, %s1126_s15  }
   0x5   :  { %1120 = dma.done.wait [#allocation6], 16128  }
   0x6   :  { %1121 = vsyncadd [#allocation6], 4294951168  ;;  %v1127_v0 = vmov 0   ;;  %vm36_vm0 = vcmask 64512   ;;  %v110_v1 = vld [vmem:[#allocation5 + $0x60] sm:$0xff]  ;;  %v107_v2 = vld [vmem:[%s1241_s0 + $0x2] sm:$0xff] }
   0x7   :  { %1064 = vset.pattern.permute.xlu0 %v1127_v0  ;;  %1065 = vset.pattern.permute.xlu1 %v1127_v0  ;;  %v35_v3 = vld [vmem:[#allocation5 + $0x58] sm:$0xff]  ;;  %v31_v4 = vld [vmem:[#allocation5 + $0x50] sm:$0xff]  ;;  %v28_v6 = vld [vmem:[%s1241_s0] sm:$0xff]  ;;  %vm178_vm1 = vcmask 647168   ;;  %v1128_v34 = vmov 0.0   ;;  %vm181_vm2 = vcmask 654336  }
   0x8   :  { %1066 = vset.pattern.permute.xlu2 %v1127_v0  ;;  %135 = vmatpush.msra.mxu2 %v110_v1  ;;  %v32_v5 = vld [vmem:[%s1241_s0 + $0x1] sm:$0xff]  ;;  %v159_v8 = vld [vmem:[#allocation5 + $0x38] sm:$0xf]  ;;  %v211_v9 = vld [vmem:[#allocation5 + $0x100] sm:$0xff]  ;;  %179 = vst.msk [vmem:[#allocation2] sm:$0x1] %vm178_vm1, %v1128_v34 }
   0x9   :  { %61 = vmatpush.msra.mxu0 %v35_v3  ;;  %1007 = vmatmul.msk.f32.vlgmr.msra.gmra.mxu2 %vm36_vm0, %v107_v2  ;;  %v157_v7 = vld [vmem:[#allocation5 + $0x28] sm:$0xff]  ;;  %v108_v10 = vld [vmem:[%s1241_s0 + $0xa] sm:$0xff]  ;;  %v625_v14 = vld [vmem:[#allocation5 + $0x40] sm:$0xff]  ;;  %180 = vst.msk [vmem:[#allocation2 + $0x15] sm:$0x1] %vm178_vm1, %v1128_v34  ;;  %vm184_vm3 = vcmask 650240  }
   0xa   :  { %96 = vmatpush.msra.mxu1 %v31_v4  ;;  %1001 = vmatmul.msk.f32.vlgmr.msra.gmra.mxu0 %vm36_vm0, %v32_v5  ;;  %v33_v11 = vld [vmem:[%s1241_s0 + $0x9] sm:$0xff]  ;;  %v109_v15 = vld [vmem:[%s1241_s0 + $0x12] sm:$0xf]  ;;  %v197_v20 = vld [vmem:[#allocation5 + $0xa8] sm:$0xff]  ;;  %vm350_vm4 = vcmask 1043456   ;;  %vm343_vm5 = vcmask 162816  }
   0xb   :  { %1004 = vmatmul.msk.f32.vlgmr.msra.gmra.mxu1 %vm36_vm0, %v28_v6  ;;  %162 = vperm.xlu0 %1064, %v157_v7   ;;  %v29_v12 = vld [vmem:[%s1241_s0 + $0x8] sm:$0xff]  ;;  %v34_v16 = vld [vmem:[%s1241_s0 + $0x11] sm:$0xf]  ;;  %v196_v22 = vld [vmem:[#allocation5 + $0xa0] sm:$0xff]  ;;  %vm484_vm6 = vcmask 483328   ;;  %vm487_vm7 = vcmask 490496  }
   0xc   :  { %172 = vperm.xlu1 %1065, %v159_v8   ;;  %227 = vmatpush.msra.mxu3 %v211_v9  ;;  %v158_v13 = vld [vmem:[#allocation5 + $0x30] sm:$0xff]  ;;  %v30_v17 = vld [vmem:[%s1241_s0 + $0x10] sm:$0xf]  ;;  %v208_v23 = vld [vmem:[#allocation5 + $0xe8] sm:$0xff]  ;;  %485 = vst.msk [vmem:[#allocation3] sm:$0x1] %vm484_vm6, %v1128_v34 }
   0xd   :  { %v198_v18 = vld [vmem:[#allocation5 + $0xb0] sm:$0xff]  ;;  %v210_v19 = vld [vmem:[#allocation5 + $0xf8] sm:$0xff]  ;;  %v207_v25 = vld [vmem:[#allocation5 + $0xe0] sm:$0xff]  ;;  %486 = vst.msk [vmem:[#allocation3 + $0xd] sm:$0x1] %vm484_vm6, %v1128_v34  ;;  %vm489_vm8 = vcmask 486400  }
   0xe   :  { %262 = vmatpush.msrb.mxu0 %v198_v18  ;;  %228 = vmatpush.msra.mxu3 %v210_v19  ;;  %v209_v21 = vld [vmem:[#allocation5 + $0xf0] sm:$0xff]  ;;  %v195_v24 = vld [vmem:[#allocation5 + $0x98] sm:$0xff]  ;;  %v193_v29 = vld [vmem:[#allocation5 + $0x88] sm:$0xff]  ;;  %vm639_vm9 = vcmask 319488   ;;  %vm642_vm10 = vcmask 326656   ;;  %vm644_vm11 = vcmask 322560  }
   0xf   :  { %v194_v26 = vld [vmem:[#allocation5 + $0x90] sm:$0xff]  ;;  %v206_v28 = vld [vmem:[#allocation5 + $0xd8] sm:$0xff]  ;;  %v293_v30 = vld [vmem:[#allocation5 + $0x148] sm:$0xff]  ;;  %640 = vst.msk [vmem:[#allocation4] sm:$0x1] %vm639_vm9, %v1128_v34  ;;  %vm763_vm12 = vcmask 97280  }
  0x10   :  { %263 = vmatpush.msrb.mxu0 %v197_v20  ;;  %229 = vmatpush.msra.mxu3 %v209_v21  ;;  %v294_v27 = vld [vmem:[#allocation5 + $0x150] sm:$0xff]  ;;  %v192_v32 = vld [vmem:[#allocation5 + $0x80] sm:$0xff]  ;;  %v204_v35 = vld [vmem:[#allocation5 + $0xc8] sm:$0xff]  ;;  %641 = vst.msk [vmem:[#allocation4 + $0xd] sm:$0x1] %vm639_vm9, %v1128_v34  ;;  %vm870_vm13 = vcmask 31744  }
  0x11   :  { %1008 = vmatmul.msk.f32.gmra.mxu2 %vm36_vm0, %v108_v10  ;;  %310 = vmatpush.msrb.mxu1 %v294_v27  ;;  %v205_v31 = vld [vmem:[#allocation5 + $0xd0] sm:$0xff]  ;;  %v292_v33 = vld [vmem:[#allocation5 + $0x140] sm:$0xff]  ;;  %v191_v36 = vld [vmem:[#allocation5 + $0x78] sm:$0xff]  ;;  %s1129_s0 = smov [#allocation8]   ;;  %s991_s8 = sshll.u32 %s1243_s2, 4  ;;  %vm982_vm14 = vcmask 25600   ;;  %s992_s8 = int_to_ptr.hbm [resolvable:$true] %s991_s8 }
  0x12   :  { %1002 = vmatmul.msk.f32.gmra.mxu0 %vm36_vm0, %v33_v11  ;;  %230 = vmatpush.msra.mxu3 %v208_v23  ;;  %v291_v37 = vld [vmem:[#allocation5 + $0x138] sm:$0xff]  ;;  %v203_v38 = vld [vmem:[#allocation5 + $0xc0] sm:$0xff]  ;;  %v190_v39 = vld [vmem:[#allocation5 + $0x70] sm:$0xff]  ;;  %s989_s5 = sshll.u32 %s1129_s0, 4  ;;  %s990_s5 = int_to_ptr.vmem [resolvable:$true] %s989_s5 }
  0x13   :  { %1005 = vmatmul.msk.f32.gmra.mxu1 %vm36_vm0, %v29_v12  ;;  %167 = vperm.xlu0 %1064, %v158_v13   ;;  %v290_v40 = vld [vmem:[#allocation5 + $0x130] sm:$0xff]  ;;  %v202_v41 = vld [vmem:[#allocation5 + $0xb8] sm:$0xff]  ;;  %v189_v42 = vld [vmem:[#allocation5 + $0x68] sm:$0xff] }
  0x14   :  { %629 = vperm.xlu1 %1065, %v625_v14   ;;  %264 = vmatpush.msrb.mxu0 %v196_v22  ;;  %v289_v43 = vld [vmem:[#allocation5 + $0x128] sm:$0xff]  ;;  %v288_v44 = vld [vmem:[#allocation5 + $0x120] sm:$0xff]  ;;  %v287_v45 = vld [vmem:[#allocation5 + $0x118] sm:$0xff] }
  0x15   :  { %231 = vmatpush.msra.mxu3 %v207_v25  ;;  %311 = vmatpush.msrb.mxu1 %v293_v30  ;;  %v286_v46 = vld [vmem:[#allocation5 + $0x110] sm:$0xff]  ;;  %v285_v47 = vld [vmem:[#allocation5 + $0x108] sm:$0xff]  ;;  %v1067_v51 = vld [vmem:[#allocation5] ss:$0 sm:$0xff] }
  0x16   :  { %265 = vmatpush.msrb.mxu0 %v195_v24  ;;  %v720_v34 = vld [vmem:[#allocation5 + $0x268] sm:$0xff] }
  0x17   :  { %232 = vmatpush.msra.mxu3 %v206_v28  ;;  %312 = vmatpush.msrb.mxu1 %v292_v33 }
  0x18   :  { %266 = vmatpush.msrb.mxu0 %v194_v26 }
  0x19   :  { %1009 = vmatmul.msk.f32.gmra.mxu2 %vm36_vm0, %v109_v15  ;;  %233 = vmatpush.msra.mxu3 %v205_v31 }
  0x1a   :  { %1003 = vmatmul.msk.f32.gmra.mxu0 %vm36_vm0, %v34_v16  ;;  %313 = vmatpush.msrb.mxu1 %v291_v37  ;;  %v1068_v37 = vld [vmem:[#allocation5 + $0x8] ss:$0 sm:$0xff] }
  0x1b   :  { %1006 = vmatmul.msk.f32.gmra.mxu1 %vm36_vm0, %v30_v17  ;;  %267 = vmatpush.msrb.mxu0 %v193_v29 }
  0x1c   :  { %234 = vmatpush.msra.mxu3 %v204_v35  ;;  %314 = vmatpush.msrb.mxu1 %v290_v40 }
  0x1d   :  { %268 = vmatpush.msrb.mxu0 %v192_v32 }
  0x1e   :  { %235 = vmatpush.msra.mxu3 %v203_v38  ;;  %315 = vmatpush.msrb.mxu1 %v289_v43 }
  0x1f   :  { %269 = vmatpush.msrb.mxu0 %v191_v36 }
  0x20   :  { %236 = vmatpush.msra.mxu3 %v202_v41  ;;  %316 = vmatpush.msrb.mxu1 %v288_v44  ;;  %v341_v44 = vld [vmem:[#allocation5 + $0x290] sm:$0xff] }
  0x21   :  { %270 = vmatpush.msrb.mxu0 %v190_v39 }
  0x22   :  { %317 = vmatpush.msrb.mxu1 %v287_v45  ;;  %v342_v45 = vld [vmem:[#allocation5 + $0x298] sm:$0xf] }
  0x23   :  { %271 = vmatpush.msrb.mxu0 %v189_v42 }
  0x24   :  { %318 = vmatpush.msrb.mxu1 %v286_v46  ;;  %v377_v46 = vld [vmem:[#allocation5 + $0x2a0] sm:$0xff] }
  0x26   :  { %319 = vmatpush.msrb.mxu1 %v285_v47  ;;  %v378_v47 = vld [vmem:[#allocation5 + $0x2a8] sm:$0xf] }
  0x7d   :  { %v163_v57 = vpop.permute.xlu0 %162 }
  0x7e   :  { %v173_v12 = vpop.permute.xlu1 %172 }
  0x85   :  { %v168_v4 = vpop.permute.xlu0 %167 }
  0x87   :  { %v63_v48 = vpop.f32.mrf.mxu0 }
  0x88   :  { %v98_v49 = vpop.f32.mrf.mxu1 }
  0x89   :  { %v99_v50 = vadd.f32 %v98_v49, %v63_v48  ;;  %v419_v48 = vld [vmem:[#allocation5 + $0x2f8] sm:$0xff]  ;;  %v458_v49 = vld [vmem:[#allocation5 + $0x348] sm:$0xff] }
  0x8a   :  { %432 = vmatpush.msrb.mxu3 %v419_v48  ;;  %465 = vmatpush.msra.mxu0 %v458_v49  ;;  %v659_v48 = vld [vmem:[#allocation5 + $0x260] sm:$0xff]  ;;  %v652_v49 = vld [vmem:[#allocation5 + $0x238] sm:$0xff] }
  0x8c   :  { %v137_v52 = vpop.f32.mrf.mxu2 }
  0x8d   :  { %v146_v53 = vadd.f32 %v137_v52, %v99_v50  ;;  %v418_v50 = vld [vmem:[#allocation5 + $0x2f0] sm:$0xff]  ;;  %v417_v52 = vld [vmem:[#allocation5 + $0x2e8] sm:$0xff] }
  0x8e   :  { %433 = vmatpush.msrb.mxu3 %v418_v50  ;;  %v658_v50 = vld [vmem:[#allocation5 + $0x258] sm:$0xff] }
  0x8f   :  { %v151_v54 = vadd.f32 %v1067_v51, %v146_v53  ;;  %v66_v55 = vpop.f32.mrf.mxu0  ;;  %v456_v53 = vld [vmem:[#allocation5 + $0x338] sm:$0xff] }
  0x90   :  { %v101_v56 = vpop.f32.mrf.mxu1  ;;  %434 = vmatpush.msrb.mxu3 %v417_v52  ;;  %v657_v52 = vld [vmem:[#allocation5 + $0x250] sm:$0xff] }
  0x91   :  { %v154_v58 = vmax.f32 %v151_v54, 0.0  ;;  %v102_v59 = vadd.f32 %v101_v56, %v66_v55  ;;  %v416_v54 = vld [vmem:[#allocation5 + $0x2e0] sm:$0xff]  ;;  %v455_v55 = vld [vmem:[#allocation5 + $0x330] sm:$0xff]  ;;  %v415_v56 = vld [vmem:[#allocation5 + $0x2d8] sm:$0xff] }
  0x92   :  { %435 = vmatpush.msrb.mxu3 %v416_v54  ;;  %v656_v54 = vld [vmem:[#allocation5 + $0x248] sm:$0xff] }
  0x93   :  { %v175_v60 = vmul.f32 %v163_v57, %v154_v58  ;;  %v454_v57 = vld [vmem:[#allocation5 + $0x328] sm:$0xff]  ;;  %v414_v58 = vld [vmem:[#allocation5 + $0x2d0] sm:$0xff] }
  0x94   :  { %v140_v61 = vpop.f32.mrf.mxu2  ;;  %436 = vmatpush.msrb.mxu3 %v415_v56  ;;  %v655_v56 = vld [vmem:[#allocation5 + $0x240] sm:$0xff] }
  0x95   :  { %182 = vst.msk [vmem:[#allocation2 + $0x1] sm:$0xff] %vm181_vm2, %v175_v60  ;;  %v147_v62 = vadd.f32 %v140_v61, %v102_v59  ;;  %v453_v59 = vld [vmem:[#allocation5 + $0x320] sm:$0xff]  ;;  %v413_v60 = vld [vmem:[#allocation5 + $0x2c8] sm:$0xff]  ;;  %v452_v61 = vld [vmem:[#allocation5 + $0x318] sm:$0xff] }
  0x96   :  { %437 = vmatpush.msrb.mxu3 %v414_v58  ;;  %v724_v58 = vld [vmem:[#allocation5 + $0x288] sm:$0xff] }
  0x97   :  { %v152_v63 = vadd.f32 %v1067_v51, %v147_v62  ;;  %v69_v0 = vpop.f32.mrf.mxu0  ;;  %v412_v62 = vld [vmem:[#allocation5 + $0x2c0] sm:$0xff] }
  0x98   :  { %v104_v1 = vpop.f32.mrf.mxu1  ;;  %438 = vmatpush.msrb.mxu3 %v413_v60  ;;  %v722_v60 = vld [vmem:[#allocation5 + $0x278] sm:$0xff] }
  0x99   :  { %v155_v2 = vmax.f32 %v152_v63, 0.0  ;;  %v105_v3 = vadd.f32 %v104_v1, %v69_v0  ;;  %v451_v63 = vld [vmem:[#allocation5 + $0x310] sm:$0xff]  ;;  %v411_v0 = vld [vmem:[#allocation5 + $0x2b8] sm:$0xff]  ;;  %v450_v1 = vld [vmem:[#allocation5 + $0x308] sm:$0xff] }
  0x9a   :  { %439 = vmatpush.msrb.mxu3 %v412_v62 }
  0x9b   :  { %v176_v5 = vmul.f32 %v168_v4, %v155_v2  ;;  %v410_v2 = vld [vmem:[#allocation5 + $0x2b0] sm:$0xff] }
  0x9c   :  { %v143_v6 = vpop.f32.mrf.mxu2  ;;  %v199_v7 = vld [vmem:[#allocation2 + $0x1] sm:$0xff]  ;;  %440 = vmatpush.msrb.mxu3 %v411_v0 }
  0x9d   :  { %v186_v8 = vld [vmem:[#allocation2] sm:$0xff]  ;;  %183 = vst.msk [vmem:[#allocation2 + $0x9] sm:$0xff] %vm181_vm2, %v176_v5  ;;  %v148_v9 = vadd.f32 %v143_v6, %v105_v3  ;;  %1010 = vmatmul.msk.f32.vlgmr.msra.gmra.mxu3 %vm181_vm2, %v199_v7  ;;  %v449_v3 = vld [vmem:[#allocation5 + $0x300] sm:$0xff] }
  0x9e   :  { %1013 = vmatmul.msk.f32.vlgmr.msrb.gmra.mxu0 %vm181_vm2, %v186_v8  ;;  %441 = vmatpush.msrb.mxu3 %v410_v2 }
  0x9f   :  { %v153_v10 = vadd.f32 %v1067_v51, %v148_v9  ;;  %v457_v51 = vld [vmem:[#allocation5 + $0x340] sm:$0xff] }
  0xa0   :  { %466 = vmatpush.msra.mxu0 %v457_v51  ;;  %v651_v51 = vld [vmem:[#allocation5 + $0x230] sm:$0xff] }
  0xa1   :  { %v156_v11 = vmax.f32 %v153_v10, 0.0  ;;  %v510_v10 = vld [vmem:[#allocation5 + $0x1d0] sm:$0xf] }
  0xa2   :  { %467 = vmatpush.msra.mxu0 %v456_v53  ;;  %1029 = vmatpush.msk.msra.mxu1 %vm350_vm4, %v510_v10  ;;  %v650_v53 = vld [vmem:[#allocation5 + $0x228] sm:$0xff] }
  0xa3   :  { %v177_v13 = vmul.f32 %v173_v12, %v156_v11  ;;  %v500_v11 = vld [vmem:[#allocation5 + $0x190] sm:$0xf]  ;;  %v509_v12 = vld [vmem:[#allocation5 + $0x1c8] sm:$0xff] }
  0xa4   :  { %v200_v14 = vld [vmem:[#allocation2 + $0x9] sm:$0xff]  ;;  %468 = vmatpush.msra.mxu0 %v455_v55  ;;  %529 = vmatpush.msra.mxu1 %v509_v12  ;;  %v649_v55 = vld [vmem:[#allocation5 + $0x220] sm:$0xff] }
  0xa5   :  { %v187_v15 = vld [vmem:[#allocation2 + $0x8] sm:$0xff]  ;;  %185 = vst.msk [vmem:[#allocation2 + $0x11] sm:$0xf] %vm184_vm3, %v177_v13  ;;  %1011 = vmatmul.msk.f32.gmra.mxu3 %vm181_vm2, %v200_v14  ;;  %v499_v13 = vld [vmem:[#allocation5 + $0x188] sm:$0xff]  ;;  %v508_v14 = vld [vmem:[#allocation5 + $0x1c0] sm:$0xff] }
  0xa6   :  { %v282_v16 = vld [vmem:[#allocation2 + $0x2] sm:$0xff]  ;;  %1014 = vmatmul.msk.f32.gmra.mxu0 %vm181_vm2, %v187_v15  ;;  %v498_v15 = vld [vmem:[#allocation5 + $0x180] sm:$0xff]  ;;  %530 = vmatpush.msra.mxu1 %v508_v14 }
  0xa7   :  { %1016 = vmatmul.msk.f32.vlgmr.msrb.gmra.mxu1 %vm181_vm2, %v282_v16  ;;  %469 = vmatpush.msra.mxu0 %v454_v57  ;;  %v507_v16 = vld [vmem:[#allocation5 + $0x1b8] sm:$0xff] }
  0xa8   :  { %531 = vmatpush.msra.mxu1 %v507_v16  ;;  %v648_v57 = vld [vmem:[#allocation5 + $0x218] sm:$0xff] }
  0xa9   :  { %470 = vmatpush.msra.mxu0 %v453_v59  ;;  %v723_v59 = vld [vmem:[#allocation5 + $0x280] sm:$0xff] }
  0xab   :  { %471 = vmatpush.msra.mxu0 %v452_v61  ;;  %v721_v61 = vld [vmem:[#allocation5 + $0x270] sm:$0xff] }
  0xac   :  { %v201_v17 = vld [vmem:[#allocation2 + $0x11] sm:$0xf] }
  0xad   :  { %v188_v18 = vld [vmem:[#allocation2 + $0x10] sm:$0xf]  ;;  %1012 = vmatmul.msk.f32.gmra.mxu3 %vm181_vm2, %v201_v17  ;;  %472 = vmatpush.msra.mxu0 %v451_v63 }
  0xae   :  { %v283_v19 = vld [vmem:[#allocation2 + $0xa] sm:$0xff]  ;;  %1015 = vmatmul.msk.f32.gmra.mxu0 %vm181_vm2, %v188_v18  ;;  %v284_v20 = vld [vmem:[#allocation2 + $0x12] sm:$0xf] }
  0xaf   :  { %1017 = vmatmul.msk.f32.gmra.mxu1 %vm181_vm2, %v283_v19  ;;  %473 = vmatpush.msra.mxu0 %v450_v1  ;;  %v497_v17 = vld [vmem:[#allocation5 + $0x178] sm:$0xff]  ;;  %v506_v18 = vld [vmem:[#allocation5 + $0x1b0] sm:$0xff] }
  0xb0   :  { %v496_v19 = vld [vmem:[#allocation5 + $0x170] sm:$0xff]  ;;  %532 = vmatpush.msra.mxu1 %v506_v18 }
  0xb1   :  { %474 = vmatpush.msra.mxu0 %v449_v3  ;;  %v1069_v1 = vld [vmem:[#allocation5 + $0x10] ss:$0 sm:$0xff] }
  0xb3   :  { %677 = vmatpush.msrb.mxu0 %v659_v48  ;;  %v816_v48 = vld [vmem:[#allocation5 + $0x368] sm:$0xff] }
  0xb5   :  { %678 = vmatpush.msrb.mxu0 %v658_v50  ;;  %v815_v50 = vld [vmem:[#allocation5 + $0x360] sm:$0xff] }
  0xb7   :  { %1018 = vmatmul.msk.f32.gmra.mxu1 %vm181_vm2, %v284_v20  ;;  %v584_v20 = vld [vmem:[#allocation5 + $0x210] sm:$0xf]  ;;  %679 = vmatpush.msrb.mxu0 %v657_v52 }
  0xb8   :  { %1035 = vmatpush.msk.msra.mxu3 %vm350_vm4, %v584_v20 }
  0xb9   :  { %680 = vmatpush.msrb.mxu0 %v656_v54  ;;  %v926_v54 = vld [vmem:[#allocation5 + $0x3e8] sm:$0xf] }
  0xbb   :  { %681 = vmatpush.msrb.mxu0 %v655_v56  ;;  %v899_v56 = vld [vmem:[#allocation5 + $0x3d0] sm:$0xf] }
 0x11b   :  { %v273_v21 = vpop.f32.mrf.mxu0 }
 0x120   :  { %v238_v22 = vpop.f32.mrf.mxu3 }
 0x121   :  { %v274_v28 = vadd.f32 %v273_v21, %v238_v22  ;;  %v505_v21 = vld [vmem:[#allocation5 + $0x1a8] sm:$0xff] }
 0x122   :  { %v495_v22 = vld [vmem:[#allocation5 + $0x168] sm:$0xff]  ;;  %533 = vmatpush.msra.mxu1 %v505_v21 }
 0x123   :  { %v276_v24 = vpop.f32.mrf.mxu0 }
 0x124   :  { %v321_v23 = vpop.f32.mrf.mxu1 }
 0x125   :  { %v330_v35 = vadd.f32 %v321_v23, %v274_v28  ;;  %v583_v23 = vld [vmem:[#allocation5 + $0x208] sm:$0xff]  ;;  %v493_v28 = vld [vmem:[#allocation5 + $0x158] sm:$0xff] }
 0x126   :  { %603 = vmatpush.msra.mxu3 %v583_v23 }
 0x127   :  { %v335_v41 = vadd.f32 %v1068_v37, %v330_v35  ;;  %v626_v35 = vld [vmem:[#allocation5 + $0x48] sm:$0xf] }
 0x128   :  { %v241_v25 = vpop.f32.mrf.mxu3  ;;  %634 = vperm.xlu2 %1066, %v626_v35  }
 0x129   :  { %v277_v27 = vadd.f32 %v276_v24, %v241_v25  ;;  %v338_v43 = vmax.f32 %v335_v41, 0.0  ;;  %v504_v24 = vld [vmem:[#allocation5 + $0x1a0] sm:$0xff] }
 0x12a   :  { %v494_v25 = vld [vmem:[#allocation5 + $0x160] sm:$0xff]  ;;  %534 = vmatpush.msra.mxu1 %v504_v24 }
 0x12b   :  { %v279_v29 = vpop.f32.mrf.mxu0 }
 0x12c   :  { %v324_v26 = vpop.f32.mrf.mxu1 }
 0x12d   :  { %v331_v32 = vadd.f32 %v324_v26, %v277_v27  ;;  %v582_v26 = vld [vmem:[#allocation5 + $0x200] sm:$0xff]  ;;  %v503_v27 = vld [vmem:[#allocation5 + $0x198] sm:$0xff] }
 0x12e   :  { %604 = vmatpush.msra.mxu3 %v582_v26  ;;  %535 = vmatpush.msra.mxu1 %v503_v27 }
 0x12f   :  { %v336_v39 = vadd.f32 %v1068_v37, %v331_v32  ;;  %v578_v32 = vld [vmem:[#allocation5 + $0x1e0] sm:$0xff] }
 0x130   :  { %v244_v30 = vpop.f32.mrf.mxu3  ;;  %706 = vmatpush.msrb.mxu1 %v652_v49  ;;  %v843_v49 = vld [vmem:[#allocation5 + $0x388] sm:$0xff] }
 0x131   :  { %v280_v31 = vadd.f32 %v279_v29, %v244_v30  ;;  %v339_v42 = vmax.f32 %v336_v39, 0.0  ;;  %v581_v29 = vld [vmem:[#allocation5 + $0x1f8] sm:$0xff]  ;;  %v580_v30 = vld [vmem:[#allocation5 + $0x1f0] sm:$0xff] }
 0x132   :  { %605 = vmatpush.msra.mxu3 %v581_v29  ;;  %707 = vmatpush.msrb.mxu1 %v651_v51 }
 0x134   :  { %v327_v33 = vpop.f32.mrf.mxu1  ;;  %606 = vmatpush.msra.mxu3 %v580_v30  ;;  %708 = vmatpush.msrb.mxu1 %v650_v53 }
 0x135   :  { %v332_v36 = vadd.f32 %v327_v33, %v280_v31  ;;  %v579_v31 = vld [vmem:[#allocation5 + $0x1e8] sm:$0xff]  ;;  %v577_v33 = vld [vmem:[#allocation5 + $0x1d8] sm:$0xff] }
 0x136   :  { %607 = vmatpush.msra.mxu3 %v579_v31  ;;  %709 = vmatpush.msrb.mxu1 %v649_v55  ;;  %v1070_v31 = vld [vmem:[#allocation5 + $0x18] ss:$0 sm:$0xff]  ;;  %v925_v55 = vld [vmem:[#allocation5 + $0x3e0] sm:$0xff] }
 0x137   :  { %v337_v38 = vadd.f32 %v1068_v37, %v332_v36 }
 0x138   :  { %608 = vmatpush.msra.mxu3 %v578_v32  ;;  %710 = vmatpush.msrb.mxu1 %v648_v57  ;;  %v898_v57 = vld [vmem:[#allocation5 + $0x3c8] sm:$0xff] }
 0x139   :  { %v340_v40 = vmax.f32 %v337_v38, 0.0 }
 0x13a   :  { %609 = vmatpush.msra.mxu3 %v577_v33 }
 0x13b   :  { %1019 = vmatpush.msk.msrb.mxu2 %vm350_vm4, %v340_v40 }
 0x13d   :  { %368 = vmatpush.msrb.mxu2 %v339_v42 }
 0x13f   :  { %369 = vmatpush.msrb.mxu2 %v338_v43 }
 0x140   :  { %1020 = vmatmul.msk.f32.vlgmr.msrb.gmra.mxu2 %vm343_vm5, %v341_v44 }
 0x141   :  { %1022 = vmatpush.msk.msra.mxu2 %vm350_vm4, %v340_v40 }
 0x143   :  { %399 = vmatpush.msra.mxu2 %v339_v42 }
 0x145   :  { %400 = vmatpush.msra.mxu2 %v338_v43 }
 0x147   :  { %1032 = vmatpush.msk.msrb.mxu2 %vm350_vm4, %v500_v11 }
 0x148   :  { %1021 = vmatmul.msk.f32.gmra.mxu2 %vm343_vm5, %v342_v45 }
 0x149   :  { %561 = vmatpush.msrb.mxu2 %v499_v13 }
 0x14b   :  { %562 = vmatpush.msrb.mxu2 %v498_v15 }
 0x14d   :  { %563 = vmatpush.msrb.mxu2 %v497_v17 }
 0x14f   :  { %564 = vmatpush.msrb.mxu2 %v496_v19 }
 0x150   :  { %1023 = vmatmul.msk.f32.vlgmr.msra.gmra.mxu2 %vm343_vm5, %v377_v46 }
 0x151   :  { %565 = vmatpush.msrb.mxu2 %v495_v22 }
 0x153   :  { %566 = vmatpush.msrb.mxu2 %v494_v25 }
 0x155   :  { %567 = vmatpush.msrb.mxu2 %v493_v28 }
 0x157   :  { %742 = vmatpush.msra.mxu2 %v724_v58  ;;  %v924_v58 = vld [vmem:[#allocation5 + $0x3d8] sm:$0xff] }
 0x158   :  { %1024 = vmatmul.msk.f32.gmra.mxu2 %vm343_vm5, %v378_v47 }
 0x159   :  { %743 = vmatpush.msra.mxu2 %v723_v59  ;;  %v897_v59 = vld [vmem:[#allocation5 + $0x3c0] sm:$0xff] }
 0x15b   :  { %744 = vmatpush.msra.mxu2 %v722_v60 }
 0x15d   :  { %745 = vmatpush.msra.mxu2 %v721_v61 }
 0x15f   :  { %746 = vmatpush.msra.mxu2 %v720_v34 }
 0x182   :  { %v635_v14 = vpop.permute.xlu2 %634 }
 0x1c3   :  { %v371_v4 = vpop.f32.mrf.mxu2 }
 0x1cb   :  { %v374_v5 = vpop.f32.mrf.mxu2 }
 0x1d3   :  { %v402_v6 = vpop.f32.mrf.mxu2 }
 0x1d4   :  { %v408_v7 = vmax.f32 %v371_v4, %v402_v6 }
 0x1d6   :  { %1025 = vmatmul.msk.f32.vlgmr.msrb.gmra.mxu3 %vm181_vm2, %v408_v7  ;;  %1027 = vmatmul.msk.f32.vlgmr.msra.gmra.mxu0 %vm181_vm2, %v408_v7  ;;  %v630_v7 = vpop.permute.xlu1 %629 }
 0x1db   :  { %v405_v8 = vpop.f32.mrf.mxu2 }
 0x1dc   :  { %v409_v9 = vmax.f32 %v374_v5, %v405_v8 }
 0x1de   :  { %1026 = vmatmul.msk.f32.gmra.mxu3 %vm181_vm2, %v409_v9  ;;  %1028 = vmatmul.msk.f32.gmra.mxu0 %vm181_vm2, %v409_v9 }
 0x253   :  { %v476_v36 = vpop.f32.mrf.mxu0 }
 0x259   :  { %v443_v37 = vpop.f32.mrf.mxu3 }
 0x25a   :  { %v482_v38 = vmax.f32 %v443_v37, %v476_v36 }
 0x25b   :  { %v479_v39 = vpop.f32.mrf.mxu0 }
 0x25c   :  { %488 = vst.msk [vmem:[#allocation3 + $0x1] sm:$0xff] %vm487_vm7, %v482_v38 }
 0x261   :  { %v446_v40 = vpop.f32.mrf.mxu3 }
 0x262   :  { %v483_v41 = vmax.f32 %v446_v40, %v479_v39  ;;  %v762_v39 = vld [vmem:[#allocation5 + $0x350] sm:$0xf]  ;;  %v790_v40 = vld [vmem:[#allocation5 + $0x358] sm:$0xf] }
 0x263   :  { %v501_v42 = vld [vmem:[#allocation3 + $0x1] sm:$0xff] }
 0x264   :  { %v491_v43 = vld [vmem:[#allocation3] sm:$0xff]  ;;  %490 = vst.msk [vmem:[#allocation3 + $0x9] sm:$0xf] %vm489_vm8, %v483_v41  ;;  %1030 = vmatmul.msk.f32.vlgmr.msra.gmra.mxu1 %vm487_vm7, %v501_v42  ;;  %v847_v41 = vld [vmem:[#allocation5 + $0x3a8] sm:$0xff] }
 0x265   :  { %1033 = vmatmul.msk.f32.vlgmr.msrb.gmra.mxu2 %vm487_vm7, %v491_v43  ;;  %v846_v42 = vld [vmem:[#allocation5 + $0x3a0] sm:$0xff]  ;;  %v845_v43 = vld [vmem:[#allocation5 + $0x398] sm:$0xff] }
 0x266   :  { %1054 = vmatpush.msk.msrb.mxu2 %vm350_vm4, %v926_v54 }
 0x268   :  { %947 = vmatpush.msrb.mxu2 %v925_v55 }
 0x26a   :  { %948 = vmatpush.msrb.mxu2 %v924_v58 }
 0x26b   :  { %v502_v44 = vld [vmem:[#allocation3 + $0x9] sm:$0xf] }
 0x26c   :  { %v492_v45 = vld [vmem:[#allocation3 + $0x8] sm:$0xf]  ;;  %1031 = vmatmul.msk.f32.gmra.mxu1 %vm487_vm7, %v502_v44  ;;  %v819_v44 = vld [vmem:[#allocation5 + $0x380] sm:$0xff] }
 0x26d   :  { %v575_v46 = vld [vmem:[#allocation3 + $0x2] sm:$0xff]  ;;  %1034 = vmatmul.msk.f32.gmra.mxu2 %vm487_vm7, %v492_v45  ;;  %v576_v47 = vld [vmem:[#allocation3 + $0xa] sm:$0xf]  ;;  %834 = vmatpush.msra.mxu1 %v819_v44  ;;  %v818_v45 = vld [vmem:[#allocation5 + $0x378] sm:$0xff] }
 0x26e   :  { %1036 = vmatmul.msk.f32.vlgmr.msra.gmra.mxu3 %vm487_vm7, %v575_v46  ;;  %v817_v46 = vld [vmem:[#allocation5 + $0x370] sm:$0xff] }
 0x26f   :  { %835 = vmatpush.msra.mxu1 %v818_v45 }
 0x271   :  { %836 = vmatpush.msra.mxu1 %v817_v46 }
 0x273   :  { %837 = vmatpush.msra.mxu1 %v816_v48 }
 0x275   :  { %838 = vmatpush.msra.mxu1 %v815_v50 }
 0x276   :  { %1037 = vmatmul.msk.f32.gmra.mxu3 %vm487_vm7, %v576_v47  ;;  %v844_v47 = vld [vmem:[#allocation5 + $0x390] sm:$0xff] }
 0x2e1   :  { %v537_v63 = vpop.f32.mrf.mxu1 }
 0x2e8   :  { %v569_v62 = vpop.f32.mrf.mxu2 }
 0x2e9   :  { %v570_v0 = vadd.f32 %v569_v62, %v537_v63  ;;  %v540_v8 = vpop.f32.mrf.mxu1  ;;  %v869_v62 = vld [vmem:[#allocation5 + $0x3b0] sm:$0x3]  ;;  %v900_v63 = vld [vmem:[#allocation5 + $0x3b8] sm:$0x3] }
 0x2f0   :  { %v572_v5 = vpop.f32.mrf.mxu2 }
 0x2f1   :  { %v611_v2 = vpop.f32.mrf.mxu3  ;;  %v573_v9 = vadd.f32 %v572_v5, %v540_v8 }
 0x2f2   :  { %v617_v3 = vadd.f32 %v611_v2, %v570_v0  ;;  %v1071_v2 = vld [vmem:[#allocation5 + $0x20] ss:$0 sm:$0xff] }
 0x2f4   :  { %v621_v4 = vadd.f32 %v1069_v1, %v617_v3 }
 0x2f6   :  { %v623_v6 = vmax.f32 %v621_v4, 0.0 }
 0x2f8   :  { %v637_v10 = vmul.f32 %v630_v7, %v623_v6 }
 0x2f9   :  { %v614_v11 = vpop.f32.mrf.mxu3 }
 0x2fa   :  { %643 = vst.msk [vmem:[#allocation4 + $0x1] sm:$0xff] %vm642_vm10, %v637_v10  ;;  %v618_v12 = vadd.f32 %v614_v11, %v573_v9 }
 0x2fc   :  { %v622_v13 = vadd.f32 %v1069_v1, %v618_v12 }
 0x2fe   :  { %v624_v15 = vmax.f32 %v622_v13, 0.0 }
 0x300   :  { %v638_v16 = vmul.f32 %v635_v14, %v624_v15 }
 0x301   :  { %v653_v17 = vld [vmem:[#allocation4 + $0x1] sm:$0xff] }
 0x302   :  { %v646_v18 = vld [vmem:[#allocation4] sm:$0xff]  ;;  %645 = vst.msk [vmem:[#allocation4 + $0x9] sm:$0xf] %vm644_vm11, %v638_v16  ;;  %1038 = vmatmul.msk.f32.vlgmr.msrb.gmra.mxu0 %vm642_vm10, %v653_v17 }
 0x303   :  { %1040 = vmatmul.msk.f32.vlgmr.msrb.gmra.mxu1 %vm642_vm10, %v646_v18 }
 0x309   :  { %v654_v19 = vld [vmem:[#allocation4 + $0x9] sm:$0xf] }
 0x30a   :  { %v647_v20 = vld [vmem:[#allocation4 + $0x8] sm:$0xf]  ;;  %1039 = vmatmul.msk.f32.gmra.mxu0 %vm642_vm10, %v654_v19 }
 0x30b   :  { %v718_v21 = vld [vmem:[#allocation4 + $0x2] sm:$0xff]  ;;  %1041 = vmatmul.msk.f32.gmra.mxu1 %vm642_vm10, %v647_v20  ;;  %v719_v22 = vld [vmem:[#allocation4 + $0xa] sm:$0xf] }
 0x30c   :  { %1042 = vmatmul.msk.f32.vlgmr.msra.gmra.mxu2 %vm642_vm10, %v718_v21 }
 0x314   :  { %1043 = vmatmul.msk.f32.gmra.mxu2 %vm642_vm10, %v719_v22 }
 0x37f   :  { %v683_v23 = vpop.f32.mrf.mxu0 }
 0x380   :  { %v712_v24 = vpop.f32.mrf.mxu1 }
 0x381   :  { %v713_v28 = vadd.f32 %v712_v24, %v683_v23 }
 0x387   :  { %v686_v26 = vpop.f32.mrf.mxu0 }
 0x388   :  { %v715_v27 = vpop.f32.mrf.mxu1 }
 0x389   :  { %v716_v29 = vadd.f32 %v715_v27, %v686_v26 }
 0x38f   :  { %v748_v25 = vpop.f32.mrf.mxu2 }
 0x390   :  { %v754_v30 = vadd.f32 %v748_v25, %v713_v28 }
 0x392   :  { %v758_v35 = vadd.f32 %v1070_v31, %v754_v30 }
 0x394   :  { %v760_v38 = vmax.f32 %v758_v35, 0.0 }
 0x397   :  { %v751_v32 = vpop.f32.mrf.mxu2 }
 0x398   :  { %v755_v33 = vadd.f32 %v751_v32, %v716_v29 }
 0x39a   :  { %v759_v36 = vadd.f32 %v1070_v31, %v755_v33 }
 0x39c   :  { %v761_v37 = vmax.f32 %v759_v36, 0.0 }
 0x39e   :  { %1044 = vmatpush.msk.msrb.mxu3 %vm350_vm4, %v761_v37  ;;  %1046 = vmatpush.msk.msra.mxu0 %vm350_vm4, %v761_v37 }
 0x3a0   :  { %785 = vmatpush.msrb.mxu3 %v760_v38  ;;  %809 = vmatpush.msra.mxu0 %v760_v38 }
 0x3a1   :  { %1045 = vmatmul.msk.f32.vlgmr.msrb.gmra.mxu3 %vm763_vm12, %v762_v39  ;;  %1047 = vmatmul.msk.f32.vlgmr.msra.gmra.mxu0 %vm763_vm12, %v790_v40 }
 0x3a2   :  { %859 = vmatpush.msra.mxu3 %v847_v41 }
 0x3a4   :  { %860 = vmatpush.msra.mxu3 %v846_v42 }
 0x3a6   :  { %861 = vmatpush.msra.mxu3 %v845_v43 }
 0x3a8   :  { %862 = vmatpush.msra.mxu3 %v844_v47 }
 0x3aa   :  { %863 = vmatpush.msra.mxu3 %v843_v49 }
 0x3ac   :  { %1056 = vmatpush.msk.msrb.mxu3 %vm350_vm4, %v899_v56 }
 0x3ae   :  { %973 = vmatpush.msrb.mxu3 %v898_v57 }
 0x3b0   :  { %974 = vmatpush.msrb.mxu3 %v897_v59 }
 0x41e   :  { %v811_v51 = vpop.f32.mrf.mxu0 }
 0x424   :  { %v787_v52 = vpop.f32.mrf.mxu3 }
 0x425   :  { %v814_v53 = vmax.f32 %v787_v52, %v811_v51 }
 0x427   :  { %1049 = vmatmul.msk.f32.vlgmr.msra.gmra.mxu3 %vm642_vm10, %v814_v53  ;;  %1048 = vmatmul.msk.f32.vlgmr.msra.gmra.mxu1 %vm642_vm10, %v814_v53 }
 0x4a4   :  { %v840_v60 = vpop.f32.mrf.mxu1 }
 0x4aa   :  { %v865_v61 = vpop.f32.mrf.mxu3 }
 0x4ab   :  { %v868_v34 = vmax.f32 %v840_v60, %v865_v61 }
 0x4ad   :  { %1050 = vmatpush.msk.msrb.mxu0 %vm350_vm4, %v868_v34  ;;  %1052 = vmatpush.msk.msrb.mxu1 %vm350_vm4, %v868_v34 }
 0x4ae   :  { %1051 = vmatmul.msk.f32.vlgmr.msrb.gmra.mxu0 %vm870_vm13, %v869_v62  ;;  %1053 = vmatmul.msk.f32.vlgmr.msrb.gmra.mxu1 %vm870_vm13, %v900_v63 }
 0x52b   :  { %v894_v0 = vpop.f32.mrf.mxu0  ;;  %v921_v1 = vpop.f32.mrf.mxu1 }
 0x52c   :  { %1055 = vmatmul.msk.f32.vlgmr.msrb.gmra.mxu2 %vm343_vm5, %v921_v1  ;;  %1057 = vmatmul.msk.f32.vlgmr.msrb.gmra.mxu3 %vm343_vm5, %v894_v0 }
 0x5af   :  { %v950_v3 = vpop.f32.mrf.mxu2  ;;  %v976_v4 = vpop.f32.mrf.mxu3 }
 0x5b0   :  { %v977_v5 = vadd.f32 %v976_v4, %v950_v3 }
 0x5b2   :  { %v981_v6 = vadd.f32 %v1071_v2, %v977_v5 }
 0x5b4   :  { %983 = vst.msk [vmem:[#allocation8] sm:$0x3] %vm982_vm14, %v981_v6 }
 0x5b5   :  { %994 = dma.vmem_to_hbm [thread:$0]  %s990_s5, 32, %s992_s8, [#allocation7]  }
 0x5b6   :  { %1122 = dma.done.wait [#allocation7], 32  }
 0x5b7   :  { %1123 = vsyncadd [#allocation7], 4294967264 }
 0x5b8   :  { %999 = vsyncpa [#allocation6], 1 }
 0x5b9   :  { %1000 = vsyncpa [#allocation7], 1 }

</bundles_post_ra>
